<compile_context>
chip_gen: v7x
topology: tpu7x:2x2x1
jax: 0.10.0
libtpu: 0.0.40
codegen_flags: <defaults>
</compile_context>

<pallas_src>
import functools

import jax
import jax.numpy as jnp
from jax.experimental import pallas as pl
from jax.experimental.pallas import tpu as pltpu
import math


def make_pe_table(d_model: int, max_len: int, dtype=jnp.float32):
    """Buffer setup (plain JAX glue) — matches the torch __init__ exactly."""
    position = jnp.arange(max_len, dtype=jnp.float32)[:, None]                 # [max_len, 1]
    div_term = jnp.exp(jnp.arange(0, d_model, 2, dtype=jnp.float32)
                       * (-math.log(10000.0) / d_model))                       # [d_model/2]
    pe = jnp.zeros((max_len, d_model), dtype=jnp.float32)
    pe = pe.at[:, 0::2].set(jnp.sin(position * div_term))
    pe = pe.at[:, 1::2].set(jnp.cos(position * div_term))
    return pe.astype(dtype)                                                    # [max_len, D]


# ----------------------------- kernels ------------------------------------- #

def _pe_add_kernel(x_ref, pe_ref, o_ref):
    # x_ref/o_ref: [tB, tC]; pe_ref: [1, tC] (broadcast over rows)
    o_ref[...] = x_ref[...] + pe_ref[...]


def _pe_add_dropout_kernel(x_ref, pe_ref, mask_ref, o_ref):
    # mask_ref already holds keep/(1-p) (0 for dropped elements) in x's dtype,
    # so the whole op is a single fused add + mul on the VPU.
    o_ref[...] = (x_ref[...] + pe_ref[...]) * mask_ref[...]


# ----------------------------- wrapper -------------------------------------- #

def _choose_tiles(rows: int, cols: int, itemsize: int, target_bytes: int = 1 << 20):
    """Pick (tB, tC) blocks: tC multiple of 128 (or full), tB multiple of 8 (or full)."""
    if cols <= 128 or cols * itemsize * 8 <= target_bytes:
        t_c = cols                                    # full trailing dim
    else:
        t_c = max(128, (target_bytes // (8 * itemsize * 128)) * 128)
        t_c = min(t_c, cols)
    max_rows = max(1, target_bytes // max(1, t_c * itemsize))
    if rows <= 8 or rows <= max_rows:
        t_b = rows                                    # full row dim
    else:
        t_b = max(8, (min(rows, max_rows) // 8) * 8)  # multiple of 8 (f32 sublane)
    return t_b, t_c


def classic_positional_encoding(x, pe_table, *, p: float = 0.1,
                                training: bool = False, rng_key=None):
    """Forward of ClassicPositionalEncoding.

    x:        [B, S, D]
    pe_table: [max_len, D]  (precomputed sinusoidal table)
    """
    B, S, D = x.shape
    cols = S * D
    itemsize = jnp.dtype(x.dtype).itemsize

    x2 = x.reshape(B, cols)                                           # lane-dense view
    pe2 = pe_table[:S, :].reshape(1, cols).astype(x.dtype)            # [1, S*D]

    t_b, t_c = _choose_tiles(B, cols, itemsize)
    grid = (pl.cdiv(B, t_b), pl.cdiv(cols, t_c))

    in_specs = [
        pl.BlockSpec((t_b, t_c), lambda i, j: (i, j)),                # x tile
        pl.BlockSpec((1, t_c), lambda i, j: (0, j)),                  # pe (row-invariant)
    ]
    args = [x2, pe2]
    bytes_accessed = (2 * B * cols + cols) * itemsize

    use_dropout = training and p > 0.0
    if use_dropout:
        if rng_key is None:
            rng_key = jax.random.PRNGKey(0)
        keep_prob = 1.0 - p
        keep = jax.random.bernoulli(rng_key, keep_prob, (B, cols))
        scale_mask = keep.astype(x.dtype) / jnp.asarray(keep_prob, x.dtype)
        in_specs.append(pl.BlockSpec((t_b, t_c), lambda i, j: (i, j)))
        args.append(scale_mask)
        bytes_accessed += B * cols * itemsize
        kernel = _pe_add_dropout_kernel
    else:
        kernel = _pe_add_kernel

    out2 = pl.pallas_call(
        kernel,
        out_shape=jax.ShapeDtypeStruct((B, cols), x.dtype),
        grid=grid,
        in_specs=in_specs,
        out_specs=pl.BlockSpec((t_b, t_c), lambda i, j: (i, j)),
        compiler_params=pltpu.CompilerParams(
            dimension_semantics=("parallel", "parallel"),   # both axes independent
            vmem_limit_bytes=32 * 1024 * 1024,
        ),
        cost_estimate=pl.CostEstimate(
            flops=(2 if use_dropout else 1) * B * cols,
            transcendentals=0,
            bytes_accessed=bytes_accessed,
        ),
    )(*args)

    return out2.reshape(B, S, D)


# ----------------------------- demo / check ---------------------------------- #

if __name__ == "__main__":
    # Shapes consistent with the module forward: [batch, seq_len, d_model]
    B, S, D = 2, 8, 32
    max_len = 64
    p = 0.1

    key = jax.random.PRNGKey(0)
    x_key, drop_key = jax.random.split(key)
    x = jax.random.normal(x_key, (B, S, D), dtype=jnp.float32)
    pe_table = make_pe_table(D, max_len, dtype=jnp.float32)

    # Eval mode (dropout = identity): deterministic, compare against reference.
    out_eval = classic_positional_encoding(x, pe_table, p=p, training=False)
    out_eval = jax.block_until_ready(out_eval)
    ref_eval = x + pe_table[None, :S, :]
    assert out_eval.shape == (B, S, D)
    assert jnp.allclose(out_eval, ref_eval, atol=1e-6), "mismatch vs reference x + pe"

    # Training mode (inverted dropout): mask stream is jax.random-based (not
    # bitwise identical to torch, but identical semantics). Reference recomputes
    # the same mask from the same key.
    out_train = classic_positional_encoding(x, pe_table, p=p, training=True,
                                            rng_key=drop_key)
    out_train = jax.block_until_ready(out_train)
    keep = jax.random.bernoulli(drop_key, 1.0 - p, (B, S * D)).reshape(B, S, D)
    ref_train = (x + pe_table[None, :S, :]) * (keep.astype(x.dtype) / (1.0 - p))
    assert out_train.shape == (B, S, D)
    assert jnp.allclose(out_train, ref_train, atol=1e-5, rtol=1e-5), \
        "mismatch vs dropout reference"

    print("KERNEL_OK")
</pallas_src>

<mosaic_0001>
module attributes {stable_mosaic.version = 11 : i64} {
  func.func @_pe_add_kernel(%arg0: i32, %arg1: i32, %arg2: memref<2x256xf32, #tpu.memory_space<vmem>>, %arg3: memref<1x256xf32, #tpu.memory_space<vmem>>, %arg4: memref<2x256xf32, #tpu.memory_space<vmem>>) attributes {dimension_semantics = [#tpu.dimension_semantics<parallel>, #tpu.dimension_semantics<parallel>], iteration_bounds = array<i64: 1, 1>, scalar_prefetch = 0 : i64, scratch_operands = 0 : i64, tpu.core_type = #tpu.core_type<tc>, window_params = [{transform_indices = @transform_0, window_bounds = array<i64: 2, 256>}, {transform_indices = @transform_1, window_bounds = array<i64: 1, 256>}, {transform_indices = @transform_2, window_bounds = array<i64: 2, 256>}]} {
    %c0 = arith.constant 0 : index
    %c0_0 = arith.constant 0 : index
    %0 = vector.load %arg2[%c0, %c0_0] : memref<2x256xf32, #tpu.memory_space<vmem>>, vector<2x256xf32>
    %c0_1 = arith.constant 0 : index
    %c0_2 = arith.constant 0 : index
    %1 = vector.load %arg3[%c0_1, %c0_2] : memref<1x256xf32, #tpu.memory_space<vmem>>, vector<1x256xf32>
    %2 = vector.broadcast %1 : vector<1x256xf32> to vector<2x256xf32>
    %3 = arith.addf %0, %2 : vector<2x256xf32>
    %c0_3 = arith.constant 0 : index
    %c0_4 = arith.constant 0 : index
    %4 = vector.load %arg4[%c0_3, %c0_4] : memref<2x256xf32, #tpu.memory_space<vmem>>, vector<2x256xf32>
    tpu.vector_store %arg4[%c0_3, %c0_4], %3 {strides = array<i32>} : memref<2x256xf32, #tpu.memory_space<vmem>>, vector<2x256xf32>,
    return
  }
  func.func @transform_0(%arg0: i32, %arg1: i32) -> (i32, i32) {
    %c0_i32 = arith.constant 0 : i32
    return %arg0, %arg1 : i32, i32
  }
  func.func @transform_1(%arg0: i32, %arg1: i32) -> (i32, i32) {
    %c0_i32 = arith.constant 0 : i32
    %c0_i32_0 = arith.constant 0 : i32
    return %c0_i32, %arg1 : i32, i32
  }
  func.func @transform_2(%arg0: i32, %arg1: i32) -> (i32, i32) {
    %c0_i32 = arith.constant 0 : i32
    return %arg0, %arg1 : i32, i32
  }
}

</mosaic_0001>

<bundles_post_ra>
// kernel: tpu_custom_call.1
= control target key start
LH: loop header
LB: loop body
LE: loop exit
PB: predicated region body
PF: predicated region fallthrough
CT: control target
= control target key end

     0   :  { %7 = vsyncpa [#allocation3], 0  ;;  %s157_s0 = inlined_call_operand.hbm [shape: f32[2,256], index: 0, kind: input, shape index: {}]   ;;  %s158_s1 = inlined_call_operand.vmem [shape: f32[1,256], index: 1, kind: input, shape index: {}]   ;;  %s159_s2 = inlined_call_operand.hbm [shape: f32[2,256], index: 2, kind: output, shape index: {}]  }
   0x1   :  { %8 = vsyncpa [#allocation4], 0  ;;  %s112_s9 = smov [#allocation2]   ;;  %s64_s13 = scalar_lea.hbm %s157_s0, 64 }
   0x2   :  { %s15_s10 = sshll.u32 %s112_s9, 4  ;;  %p65_p0 = scmp.ne.s32.totalorder %s157_s0, %s64_s13  ;;  %s16_s10 = int_to_ptr.vmem [resolvable:$true] %s15_s10 }
   0x3   :  { %p68_p1 = scmp.lt.u32.totalorder %s64_s13, %s157_s0 }
   0x5   :  { %p70_p2 = pnand %p68_p1, %p65_p0 }
   0x7   :  { %73 = shalt.err (!%p70_p2)
}
   0x8   :  { %s74_s18 = scalar_lea.vmem %s16_s10, 64  ;;  %p79_p4 = scmp.lt.s32.totalorder %s16_s10, %s16_s10 }
   0x9   :  { %p75_p3 = scmp.ne.s32.totalorder %s16_s10, %s74_s18  ;;  %p80_p5 = scmp.lt.s32.totalorder %s74_s18, %s74_s18 }
   0xb   :  { %p81_p6 = por %p80_p5, %p79_p4 }
   0xd   :  { %p82_p7 = pnand %p81_p6, %p75_p3 }
   0xf   :  { %85 = shalt.err (!%p82_p7)
}
  0x10   :  { %18 = dma.hbm_to_vmem [thread:$0]  %s157_s0, 64, %s16_s10, [#allocation3]  }
  0x11   :  { %108 = dma.done.wait [#allocation3], 64  }
  0x12   :  { %109 = vsyncadd [#allocation3], 4294967232  ;;  %v27_v0 = vlaneseq  ;;  %v113_v1 = vmov 1983009808   ;;  %v25_v7 = vld [vmem:[%s158_s1] sm:$0x3] }
  0x13   :  { %v37_v2 = vunpack.c.l.s4 %v113_v1  ;;  %v24_v12 = vld [vmem:[#allocation2] sm:$0xf]  ;;  %s114_s23 = smov [#allocation5]  }
  0x14   :  { %v28_v3 = vshrl.u32 %v27_v0, 7  ;;  %s52_s0 = sshll.u32 %s114_s23, 4  ;;  %s53_s0 = int_to_ptr.vmem [resolvable:$true] %s52_s0 }
  0x15   :  { %v38_v6 = vunpack.c.0.s8 %v37_v2  ;;  %s86_s24 = scalar_lea.vmem %s53_s0, 64  ;;  %p91_p9 = scmp.lt.s32.totalorder %s53_s0, %s53_s0 }
  0x16   :  { %v29_v4 = vsub.s32 0, %v28_v3  ;;  %v33_v5 = vsub.s32 1, %v28_v3  ;;  %p87_p8 = scmp.ne.s32.totalorder %s53_s0, %s86_s24  ;;  %p92_p10 = scmp.lt.s32.totalorder %s86_s24, %s86_s24 }
  0x17   :  { %v41_v10 = vsub.s32 %v38_v6, %v28_v3 }
  0x18   :  { %v30_v8 = vrot.slane %v25_v7, %v29_v4  ;;  %v34_v9 = vrot.slane %v25_v7, %v33_v5  ;;  %p93_p11 = por %p92_p10, %p91_p9 }
  0x1a   :  { %v35_v11 = vcombine.low %v30_v8, %v34_v9  ;;  %p94_p12 = pnand %p93_p11, %p87_p8 }
  0x1c   :  { %v42_v13 = vrot.slane %v35_v11, %v41_v10 }
  0x1e   :  { %v44_v14 = vadd.f32 %v42_v13, %v24_v12 }
  0x20   :  { %45 = vst [vmem:[#allocation5] sm:$0xf] %v44_v14 }
  0x21   :  { %97 = shalt.err (!%p94_p12)
}
  0x22   :  { %s98_s26 = scalar_lea.hbm %s159_s2, 64 }
  0x23   :  { %p99_p13 = scmp.ne.s32.totalorder %s159_s2, %s98_s26  ;;  %p102_p0 = scmp.lt.u32.totalorder %s98_s26, %s159_s2 }
  0x25   :  { %p104_p1 = pnand %p102_p0, %p99_p13 }
  0x27   :  { %107 = shalt.err (!%p104_p1)
}
  0x28   :  { %55 = dma.vmem_to_hbm [thread:$0]  %s53_s0, 64, %s159_s2, [#allocation4]  }
  0x29   :  { %110 = dma.done.wait [#allocation4], 64  }
  0x2a   :  { %111 = vsyncadd [#allocation4], 4294967232 }
  0x2b   :  { %59 = vsyncpa [#allocation3], 1 }
  0x2c   :  { %60 = vsyncpa [#allocation4], 1 }

</bundles_post_ra>
